<compile_context>
chip_gen: v5e
topology: v5e:2x2
jax: 0.10.0
libtpu: 0.0.40
codegen_flags: <defaults>
</compile_context>

<pallas_src>
import functools

import jax
import jax.numpy as jnp
from jax.experimental import pallas as pl
from jax.experimental.pallas import tpu as pltpu

_TILE_M_MAX = 2048           # absolute rows-per-grid-step ceiling
_X_VMEM_BUDGET = 24 << 20    # bytes allowed for the double-buffered x stream
_VMEM_LIMIT_CAP = 48 << 20   # stay comfortably under v7x's 64 MiB physical VMEM
_NEG_INF = -1e30             # bias for padded (phantom) classes (f32-safe)


def _round_up(v, a):
    return -(-v // a) * a


def _pick_tile_m(m, two_h, x_itemsize):
    """Rows per grid step: VMEM-capped, 8-aligned, megacore-balanced."""
    # Cap so 2 (double buffer) * tile_m * two_h * itemsize fits the x budget.
    cap = _X_VMEM_BUDGET // (2 * two_h * x_itemsize)
    cap = max(8, (cap // 8) * 8)
    tile_max = min(_TILE_M_MAX, cap)
    if m <= tile_max and m <= 1024:
        return m                                  # single block
    # Even number of near-equal, 8-aligned blocks: balanced v7x megacore split,
    # amortized per-step overhead everywhere.
    n_blocks = max(2, 2 * (-(-m // (2 * tile_max))))
    return min(tile_max, _round_up(-(-m // n_blocks), 8))


def _hyperpartisan_kernel(x_ref, w_ref, b_ref, o_ref, *, num_classes):
    # x_ref: [TM, 2H] (f32 or bf16), w_ref: [2H, Cp], b_ref: [1, Cp] f32,
    # o_ref: [TM, C] f32.
    logits = jnp.dot(x_ref[...], w_ref[...],
                     preferred_element_type=jnp.float32) + b_ref[...]

    # Numerically-stable log_softmax along the class axis.  Padded classes
    # have logit ~ -1e30, so exp(shifted) == 0 for them and the real-class
    # results are identical to an unpadded log_softmax.
    m = jnp.max(logits, axis=-1, keepdims=True)
    shifted = logits - m
    lse = jnp.log(jnp.sum(jnp.exp(shifted), axis=-1, keepdims=True))
    out = shifted - lse
    # Write only the real classes; output block last dim == full array dim.
    o_ref[...] = out[:, :num_classes].astype(o_ref.dtype)


def prepare_params(w_t, b, compute_dtype=jnp.float32):
    """Pad the class axis once (lane-dense 128) and cast W to compute dtype.

    Done outside the per-call path so the jitted forward does zero pad/cast
    work.  Bias stays f32 so the -1e30 phantom-class trick is always safe.
    """
    two_h, c = w_t.shape
    c_pad = _round_up(max(c, 1), 128)
    w_pad = jnp.pad(w_t.astype(compute_dtype), ((0, 0), (0, c_pad - c)))
    b_pad = jnp.pad(b.astype(jnp.float32).reshape(1, c),
                    ((0, 0), (0, c_pad - c)), constant_values=_NEG_INF)
    return w_pad, b_pad


@functools.partial(jax.jit, static_argnames=("num_classes",))
def hyperpartisan_forward(x, w_pad, b_pad, *, num_classes):
    """x: [..., 2H] (f32 or bf16), w_pad: [2H, Cp], b_pad: [1, Cp] f32."""
    *lead, two_h = x.shape
    c = num_classes
    c_pad = w_pad.shape[1]

    x2d = x.reshape(-1, two_h)                    # [M, 2H]
    m = x2d.shape[0]
    x_bytes = x2d.dtype.itemsize
    w_bytes = w_pad.dtype.itemsize

    tile_m = _pick_tile_m(m, two_h, x_bytes)
    grid = pl.cdiv(m, tile_m)

    # VMEM budget: x double-buffer + single-buffered W + bias + out
    # double-buffer + f32 logits/exp temporaries, plus headroom.
    vmem_bytes = (2 * tile_m * two_h * x_bytes
                  + two_h * c_pad * w_bytes
                  + c_pad * 4
                  + 2 * tile_m * c * 4
                  + 4 * tile_m * c_pad * 4)
    vmem_limit = int(min(_VMEM_LIMIT_CAP,
                         max(32 << 20, vmem_bytes + (4 << 20))))

    cost = pl.CostEstimate(
        flops=2 * m * two_h * c_pad,
        transcendentals=m * (c_pad + 1),
        bytes_accessed=(m * two_h * x_bytes + two_h * c_pad * w_bytes
                        + c_pad * 4 + m * c * 4),
    )

    kernel = functools.partial(_hyperpartisan_kernel, num_classes=c)

    out2d = pl.pallas_call(
        kernel,
        out_shape=jax.ShapeDtypeStruct((m, c), jnp.float32),
        grid_spec=pl.GridSpec(
            grid=(grid,),
            in_specs=[
                # streamed, auto double-buffered
                pl.BlockSpec((tile_m, two_h), lambda i: (i, 0)),
                # VMEM-resident across the whole grid; single-buffered
                pl.BlockSpec((two_h, c_pad), lambda i: (0, 0),
                             pipeline_mode=pl.Buffered(buffer_count=1)),
                pl.BlockSpec((1, c_pad), lambda i: (0, 0),
                             pipeline_mode=pl.Buffered(buffer_count=1)),
            ],
            out_specs=pl.BlockSpec((tile_m, c), lambda i: (i, 0)),
        ),
        compiler_params=pltpu.CompilerParams(
            dimension_semantics=("parallel",),
            vmem_limit_bytes=vmem_limit,
        ),
        cost_estimate=cost,
    )(x2d, w_pad, b_pad)

    return out2d.reshape(*lead, c)


def init_params(key, hidden_dim, num_classes):
    """Deterministic nn.Linear(hidden_dim*2, num_classes)-style init."""
    k_w, k_b = jax.random.split(key)
    fan_in = hidden_dim * 2
    bound = 1.0 / jnp.sqrt(fan_in)
    # PyTorch stores weight as [C, 2H]; we keep the transposed [2H, C].
    w = jax.random.uniform(k_w, (num_classes, fan_in), jnp.float32, -bound, bound)
    b = jax.random.uniform(k_b, (num_classes,), jnp.float32, -bound, bound)
    return w.T, b


if __name__ == "__main__":
    batch, seq, hidden_dim, num_classes = 2, 8, 32, 4
    key = jax.random.PRNGKey(0)
    k_x, k_x2, k_p = jax.random.split(key, 3)

    x = jax.random.normal(k_x, (batch, seq, hidden_dim * 2), jnp.float32)
    w_t, b = init_params(k_p, hidden_dim, num_classes)

    # --- f32 path: exact module semantics, single block ---
    w_pad32, b_pad = prepare_params(w_t, b, jnp.float32)
    out = hyperpartisan_forward(x, w_pad32, b_pad, num_classes=num_classes)
    jax.block_until_ready(out)
    ref = jax.nn.log_softmax(x @ w_t + b, axis=-1)
    assert out.shape == (batch, seq, num_classes)
    assert jnp.allclose(out, ref, atol=1e-5, rtol=1e-5)

    # --- bf16-streamed perf path: multi-block grid (m = 1200 -> 2 blocks) ---
    batch2, seq2 = 4, 300
    x2 = jax.random.normal(k_x2, (batch2, seq2, hidden_dim * 2), jnp.float32)
    w_pad16, b_pad16 = prepare_params(w_t, b, jnp.bfloat16)
    out2 = hyperpartisan_forward(x2.astype(jnp.bfloat16), w_pad16, b_pad16,
                                 num_classes=num_classes)
    jax.block_until_ready(out2)
    ref2 = jax.nn.log_softmax(x2 @ w_t + b, axis=-1)
    assert out2.shape == (batch2, seq2, num_classes)
    assert jnp.allclose(out2, ref2, atol=5e-2)

    print("KERNEL_OK")
</pallas_src>

<mosaic_0001>
module attributes {stable_mosaic.version = 11 : i64} {
  func.func @_hyperpartisan_kernel(%arg0: i32, %arg1: memref<16x64xf32, #tpu.memory_space<vmem>>, %arg2: memref<64x128xf32, #tpu.memory_space<vmem>>, %arg3: memref<1x128xf32, #tpu.memory_space<vmem>>, %arg4: memref<16x4xf32, #tpu.memory_space<vmem>>) attributes {dimension_semantics = [#tpu.dimension_semantics<parallel>], iteration_bounds = array<i64: 1>, scalar_prefetch = 0 : i64, scratch_operands = 0 : i64, tpu.core_type = #tpu.core_type<tc>, window_params = [{transform_indices = @transform_0, window_bounds = array<i64: 16, 64>}, {pipeline_mode = #tpu.pipeline_mode<synchronous>, transform_indices = @transform_1, window_bounds = array<i64: 64, 128>}, {pipeline_mode = #tpu.pipeline_mode<synchronous>, transform_indices = @transform_2, window_bounds = array<i64: 1, 128>}, {transform_indices = @transform_3, window_bounds = array<i64: 16, 4>}]} {
    %c0 = arith.constant 0 : index
    %c0_0 = arith.constant 0 : index
    %0 = vector.load %arg1[%c0, %c0_0] : memref<16x64xf32, #tpu.memory_space<vmem>>, vector<16x64xf32>
    %c0_1 = arith.constant 0 : index
    %c0_2 = arith.constant 0 : index
    %1 = vector.load %arg2[%c0_1, %c0_2] : memref<64x128xf32, #tpu.memory_space<vmem>>, vector<64x128xf32>
    %cst = arith.constant dense<0.000000e+00> : vector<16x128xf32>
    %2 = tpu.matmul %0, %1, %cst {dimension_numbers = #tpu.dot_dimension_numbers<[1], [0], [0], [1], [0, 0, 1, 1], [], []>} : vector<16x64xf32>, vector<64x128xf32>, vector<16x128xf32> -> vector<16x128xf32>
    %c0_3 = arith.constant 0 : index
    %c0_4 = arith.constant 0 : index
    %3 = vector.load %arg3[%c0_3, %c0_4] : memref<1x128xf32, #tpu.memory_space<vmem>>, vector<1x128xf32>
    %4 = vector.broadcast %3 : vector<1x128xf32> to vector<16x128xf32>
    %5 = arith.addf %2, %4 : vector<16x128xf32>
    %cst_5 = arith.constant dense<0xFF800000> : vector<16xf32>
    %6 = vector.multi_reduction <maximumf>, %5, %cst_5 [1] : vector<16x128xf32> to vector<16xf32>
    %7 = vector.shape_cast %6 : vector<16xf32> to vector<16x1xf32>
    %8 = vector.broadcast %7 : vector<16x1xf32> to vector<16x128xf32>
    %9 = arith.subf %5, %8 : vector<16x128xf32>
    %10 = math.exp %9 : vector<16x128xf32>
    %cst_6 = arith.constant dense<0.000000e+00> : vector<16xf32>
    %11 = vector.multi_reduction <add>, %10, %cst_6 [1] : vector<16x128xf32> to vector<16xf32>
    %12 = vector.shape_cast %11 : vector<16xf32> to vector<16x1xf32>
    %13 = math.log %12 : vector<16x1xf32>
    %14 = vector.broadcast %13 : vector<16x1xf32> to vector<16x128xf32>
    %15 = arith.subf %9, %14 : vector<16x128xf32>
    %16 = vector.extract_strided_slice %15 {offsets = [0, 0], sizes = [16, 4], strides = [1, 1]} : vector<16x128xf32> to vector<16x4xf32>
    %c0_7 = arith.constant 0 : index
    %c0_8 = arith.constant 0 : index
    %17 = vector.load %arg4[%c0_7, %c0_8] : memref<16x4xf32, #tpu.memory_space<vmem>>, vector<16x4xf32>
    tpu.vector_store %arg4[%c0_7, %c0_8], %16 {strides = array<i32>} : memref<16x4xf32, #tpu.memory_space<vmem>>, vector<16x4xf32>,
    return
  }
  func.func @transform_0(%arg0: i32) -> (i32, i32) {
    %c0_i32 = arith.constant 0 : i32
    %c0_i32_0 = arith.constant 0 : i32
    return %arg0, %c0_i32 : i32, i32
  }
  func.func @transform_1(%arg0: i32) -> (i32, i32) {
    %c0_i32 = arith.constant 0 : i32
    %c0_i32_0 = arith.constant 0 : i32
    %c0_i32_1 = arith.constant 0 : i32
    return %c0_i32, %c0_i32_0 : i32, i32
  }
  func.func @transform_2(%arg0: i32) -> (i32, i32) {
    %c0_i32 = arith.constant 0 : i32
    %c0_i32_0 = arith.constant 0 : i32
    %c0_i32_1 = arith.constant 0 : i32
    return %c0_i32, %c0_i32_0 : i32, i32
  }
  func.func @transform_3(%arg0: i32) -> (i32, i32) {
    %c0_i32 = arith.constant 0 : i32
    %c0_i32_0 = arith.constant 0 : i32
    return %arg0, %c0_i32 : i32, i32
  }
}

</mosaic_0001>

<bundles_post_ra>
// kernel: hyperpartisan_forward.1
= control target key start
LH: loop header
LB: loop body
LE: loop exit
PB: predicated region body
PF: predicated region fallthrough
CT: control target
= control target key end

     0   :  { %8 = vsyncpa [#allocation3], 0  ;;  %s233_s0 = inlined_call_operand.hbm [shape: f32[16,64], index: 0, kind: input, shape index: {}]   ;;  %s234_s1 = inlined_call_operand.hbm [shape: f32[64,128], index: 1, kind: input, shape index: {}]   ;;  %s235_s2 = inlined_call_operand.vmem [shape: f32[1,128], index: 2, kind: input, shape index: {}]   ;;  %s236_s3 = inlined_call_operand.vmem [shape: f32[16,4], index: 3, kind: output, shape index: {}]  }
   0x1   :  { %s14_s14 = sshll.u32 %s233_s0, 4  ;;  %s15_s14 = int_to_ptr.hbm [resolvable:$true] %s14_s14 }
   0x2   :  { %9 = vsyncpa [#allocation5], 0  ;;  %s194_s15 = smov [#allocation2]   ;;  %s27_s19 = sshll.u32 %s234_s1, 4  ;;  %s28_s19 = int_to_ptr.hbm [resolvable:$true] %s27_s19 }
   0x3   :  { %s16_s16 = sshll.u32 %s194_s15, 4  ;;  %s195_s20 = smov 128   ;;  %s17_s16 = int_to_ptr.vmem [resolvable:$true] %s16_s16 }
   0x4   :  { %s196_s21 = smov 8   ;;  %s197_s22 = smov [#allocation4]  }
   0x5   :  { %22 = dma.hbm_to_vmem [thread:$0]  %s15_s14, 256, %s17_s16, [#allocation3], %s195_s20, %s195_s20, %s196_s21  }
   0x6   :  { %s29_s23 = sshll.u32 %s197_s22, 4  ;;  %s30_s23 = int_to_ptr.vmem [resolvable:$true] %s29_s23 }
   0x7   :  { %35 = dma.hbm_to_vmem [thread:$0]  %s28_s19, 1024, %s30_s23, [#allocation5], %s195_s20, %s195_s20, %s196_s21  }
   0x8   :  { %190 = dma.done.wait [#allocation3], 256  }
   0x9   :  { %191 = vsyncadd [#allocation3], 4294967040 }
   0xa   :  { %192 = dma.done.wait [#allocation5], 1024  }
   0xb   :  { %193 = vsyncadd [#allocation5], 4294966272  ;;  %v55_v0 = vld [vmem:[#allocation4 + $0x38] sm:$0xff]  ;;  %v54_v1 = vld [vmem:[#allocation4 + $0x30] sm:$0xff]  ;;  %vm60_vm0 = vcmask 523264   ;;  %vm110_vm1 = vcmask 31744  }
   0xc   :  { %75 = vmatpush.msra.mxu0 %v55_v0  ;;  %121 = vmatpush.msra.mxu1 %v55_v0  ;;  %v53_v2 = vld [vmem:[#allocation4 + $0x28] sm:$0xff]  ;;  %v52_v3 = vld [vmem:[#allocation4 + $0x20] sm:$0xff]  ;;  %v51_v4 = vld [vmem:[#allocation4 + $0x18] sm:$0xff] }
   0xd   :  { %v50_v5 = vld [vmem:[#allocation4 + $0x10] sm:$0xff]  ;;  %v49_v6 = vld [vmem:[#allocation4 + $0x8] sm:$0xff]  ;;  %v48_v7 = vld [vmem:[#allocation4] sm:$0xff] }
   0xe   :  { %76 = vmatpush.msra.mxu0 %v54_v1  ;;  %122 = vmatpush.msra.mxu1 %v54_v1  ;;  %v46_v8 = vld [vmem:[#allocation2] sm:$0xff]  ;;  %v47_v9 = vld [vmem:[#allocation2 + $0x8] sm:$0xff] }
   0xf   :  { %v133_v10 = vld [vmem:[%s235_s2] ss:$0 sm:$0xff] }
  0x10   :  { %77 = vmatpush.msra.mxu0 %v53_v2  ;;  %123 = vmatpush.msra.mxu1 %v53_v2 }
  0x12   :  { %78 = vmatpush.msra.mxu0 %v52_v3  ;;  %124 = vmatpush.msra.mxu1 %v52_v3 }
  0x14   :  { %79 = vmatpush.msra.mxu0 %v51_v4  ;;  %125 = vmatpush.msra.mxu1 %v51_v4 }
  0x16   :  { %80 = vmatpush.msra.mxu0 %v50_v5  ;;  %126 = vmatpush.msra.mxu1 %v50_v5 }
  0x18   :  { %81 = vmatpush.msra.mxu0 %v49_v6  ;;  %127 = vmatpush.msra.mxu1 %v49_v6 }
  0x1a   :  { %82 = vmatpush.msra.mxu0 %v48_v7  ;;  %128 = vmatpush.msra.mxu1 %v48_v7 }
  0x1b   :  { %119 = vmatmul.msk.f32.vlgmr.msra.gmra.mxu0 %vm60_vm0, %v46_v8  ;;  %120 = vmatmul.msk.f32.vlgmr.msra.gmra.mxu1 %vm60_vm0, %v47_v9 }
  0x98   :  { %v84_v11 = vpop.f32.mrf.mxu0  ;;  %v87_v13 = vpop.f32.mrf.mxu1 }
  0x99   :  { %v85_v12 = vadd.f32 %v133_v10, %v84_v11  ;;  %v88_v14 = vadd.f32 %v133_v10, %v87_v13 }
  0x9b   :  { %90 = vmax.xlane.f32.xlu0 %v85_v12 }
  0xa3   :  { %92 = vmax.xlane.f32.xlu0 %v88_v14 }
 0x10e   :  { %v91_v15 = vpop.xlane.xlu0 %90 }
 0x10f   :  { %v94_v16 = vsub.f32 %v85_v12, %v91_v15 }
 0x111   :  { %v96_v17 = vmul.f32 1.442695, %v94_v16 }
 0x113   :  { %134 = vpow2.f32 %v96_v17 }
 0x116   :  { %v93_v18 = vpop.xlane.xlu0 %92 }
 0x117   :  { %v95_v19 = vsub.f32 %v88_v14, %v93_v18 }
 0x119   :  { %v135_v20 = vpop.eup %134  ;;  %v98_v21 = vmul.f32 1.442695, %v95_v19 }
 0x11a   :  { %100 = vadd.xlane.f32.xlu1 %v135_v20 }
 0x11b   :  { %136 = vpow2.f32 %v98_v21 }
 0x121   :  { %v137_v22 = vpop.eup %136 }
 0x122   :  { %102 = vadd.xlane.f32.xlu1 %v137_v22 }
 0x18d   :  { %v101_v23 = vpop.xlane.xlu1 %100 }
 0x18e   :  { %138 = vlog2.f32 %v101_v23 }
 0x194   :  { %v139_v24 = vpop.eup %138 }
 0x195   :  { %v105_v25 = vmul.f32 0.6931472, %v139_v24  ;;  %v103_v26 = vpop.xlane.xlu1 %102 }
 0x196   :  { %140 = vlog2.f32 %v103_v26 }
 0x197   :  { %v108_v27 = vsub.f32 %v94_v16, %v105_v25 }
 0x199   :  { %111 = vst.msk [vmem:[%s236_s3] sm:$0xff] %vm110_vm1, %v108_v27 }
 0x19c   :  { %v141_v28 = vpop.eup %140 }
 0x19d   :  { %v107_v29 = vmul.f32 0.6931472, %v141_v28 }
 0x19f   :  { %v109_v30 = vsub.f32 %v95_v19, %v107_v29 }
 0x1a1   :  { %112 = vst.msk [vmem:[%s236_s3 + $0x8] sm:$0xff] %vm110_vm1, %v109_v30 }
 0x1a2   :  { %117 = vsyncpa [#allocation3], 1 }
 0x1a3   :  { %118 = vsyncpa [#allocation5], 1 }

</bundles_post_ra>
